<compile_context>
chip_gen: v7x
topology: tpu7x:2x2x1
jax: 0.10.0
libtpu: 0.0.40
codegen_flags: <defaults>
</compile_context>

<pallas_src>
import functools

import jax
import jax.numpy as jnp
from jax import lax
from jax.experimental import pallas as pl
from jax.experimental.pallas import tpu as pltpu


# ----------------------------------------------------------------------------
# Kernel: one lane-dense MXU matmul + bias + ReLU per grid step.
# ----------------------------------------------------------------------------
def _matmul_bias_relu_kernel(x_ref, w_ref, b_ref, o_ref):
    # x_ref: (rows_blk, K*W*Cin)   im2row'd LHS (K vertical taps folded into
    #                              the contraction axis -> 192-deep here)
    # w_ref: (K*W*Cin, W*Cout)     banded weights (W padding folded into zeros)
    # b_ref: (1, W*Cout)           bias tiled across W (lane-dense)
    # o_ref: (rows_blk, W*Cout)    lane-dense output slab (128 lanes here)
    acc = jnp.dot(x_ref[...], w_ref[...], preferred_element_type=jnp.float32)
    o_ref[...] = jnp.maximum(acc + b_ref[...], 0.0).astype(o_ref.dtype)


def _num_tensorcores() -> int:
    """Best-effort TensorCore count (v5e/v6e: 1, v7x: 2); defaults to 1."""
    try:
        info = pltpu.get_tpu_info()
    except Exception:
        return 1
    for attr in ("num_cores", "core_count", "num_tensorcores"):
        v = getattr(info, attr, None)
        if isinstance(v, int) and v > 0:
            return v
    return 1


def _pick_num_steps(rows: int, num_tc: int) -> int:
    """Grid steps along the row axis.

    One step unless splitting across TensorCores still leaves >= 256 MXU rows
    per step (otherwise the ~600-cycle per-step overhead and poor MXU row fill
    dominate; v5e/v6e have a single TensorCore anyway).  Very large problems
    are split further so the per-step f32 accumulator stays <= ~512 rows.
    """
    n = 1
    target = max(2, num_tc)
    if rows % target == 0:
        step = rows // target
        if step >= 256 and step % 8 == 0:
            n = target
    while rows // n > 512 and rows % (2 * n) == 0 and (rows // (2 * n)) % 8 == 0:
        n *= 2
    return n


# ----------------------------------------------------------------------------
# One-time (per weight update) parameter prep — hoisted out of the forward.
# ----------------------------------------------------------------------------
def prepare_conv_params(w_oihw, bias, width, *, dtype=jnp.float32):
    """Build the (K*W*Cin, W*Cout) banded weight and lane-tiled bias.

    band[kh*W*Cin + w_in*Cin + c, w_out*Cout + o] =
        W[o, c, kh, w_in - w_out + pad]   if 0 <= w_in - w_out + pad < K else 0
    so that conv along W (with "same" zero padding) is an ordinary matmul and
    the K vertical taps sit contiguously along the contraction axis.
    """
    Cout, Cin, K, K2 = w_oihw.shape
    assert K == K2 and K % 2 == 1, "square odd kernel expected"
    pad = (K - 1) // 2
    W = width

    w_khkwco = jnp.transpose(w_oihw, (2, 3, 1, 0))            # (K, K, Cin, Cout)
    w_in_idx = jnp.arange(W)[:, None]
    w_out_idx = jnp.arange(W)[None, :]
    kw = w_in_idx - w_out_idx + pad                           # (W, W)
    valid = (kw >= 0) & (kw < K)
    band = w_khkwco[:, jnp.clip(kw, 0, K - 1)]                # (K, W, W, Cin, Cout)
    band = jnp.where(valid[None, :, :, None, None], band, 0.0)
    band = band.transpose(0, 1, 3, 2, 4).reshape(K * W * Cin, W * Cout)

    # TODO(synk): the band is O(W^2) in size/FLOPs; for real crowd-counting
    # image widths switch to W-tiled per-tap (K*Cin, Cout) weights instead.
    assert band.size * 4 <= 24 * (1 << 20), \
        "banded weight too large for VMEM; tile W instead of using a full band"

    b_tiled = jnp.tile(bias, W).reshape(1, W * Cout)
    return band.astype(dtype), b_tiled.astype(dtype)


# ----------------------------------------------------------------------------
# Forward pass of the Conv2d module (conv + bias + ReLU, bn=False).
# ----------------------------------------------------------------------------
def conv2d_forward(x_nchw, band, b_tiled, *, kernel_size=3, stride=1,
                   dilation=1, same_padding=True, bn=False, NL='relu'):
    # Guard the configs this kernel actually implements (fail loudly).
    assert stride == 1 and dilation == 1, "only stride=1, dilation=1 supported"
    assert same_padding and kernel_size % 2 == 1, "only odd-K same padding supported"
    assert not bn, "bn=True (BatchNorm2d) not implemented in this kernel"
    assert NL == 'relu', "only NL='relu' implemented in this kernel"

    N, Cin, H, W = x_nchw.shape
    K = kernel_size
    pad = (K - 1) // 2
    WCin = W * Cin
    WCout = b_tiled.shape[-1]
    Cout = WCout // W
    assert band.shape == (K * WCin, WCout)

    # ---- layout prep (plain JAX glue) --------------------------------------
    # NCHW -> NHWC -> (N, H, W*Cin); pad only along H (W padding lives in the
    # band's zeros); fold the K vertical taps into the contraction axis so the
    # kernel is a single lane-dense matmul.
    x_nhwc = jnp.transpose(x_nchw, (0, 2, 3, 1)).reshape(N, H, WCin)
    x_padh = jnp.pad(x_nhwc, ((0, 0), (pad, pad), (0, 0)))    # (N, H+2p, W*Cin)
    lhs = jnp.concatenate([x_padh[:, kh:kh + H, :] for kh in range(K)], axis=-1)
    lhs = lhs.reshape(N * H, K * WCin)                         # (N*H, K*W*Cin)

    rows = N * H
    n_steps = _pick_num_steps(rows, _num_tensorcores())
    rows_blk = rows // n_steps

    # Explicit VMEM budget (double-buffered in/out blocks + resident band).
    need = 4 * (2 * rows_blk * (K * WCin + WCout) + band.size + b_tiled.size)
    vmem_limit = int(min(max(4 * need, 16 << 20), 32 << 20))

    out = pl.pallas_call(
        _matmul_bias_relu_kernel,
        out_shape=jax.ShapeDtypeStruct((rows, WCout), x_nchw.dtype),
        grid_spec=pltpu.PrefetchScalarGridSpec(
            num_scalar_prefetch=0,
            grid=(n_steps,),
            in_specs=[
                pl.BlockSpec((rows_blk, K * WCin), lambda i: (i, 0)),
                pl.BlockSpec((K * WCin, WCout), lambda i: (0, 0)),
                pl.BlockSpec((1, WCout), lambda i: (0, 0)),
            ],
            out_specs=pl.BlockSpec((rows_blk, WCout), lambda i: (i, 0)),
        ),
        compiler_params=pltpu.CompilerParams(
            dimension_semantics=("parallel",),
            vmem_limit_bytes=vmem_limit),
    )(lhs, band, b_tiled)

    # (N*H, W*Cout) -> NCHW.  Consumers that can take the lane-dense layout
    # should skip this transpose (it is pure glue).
    return jnp.transpose(out.reshape(N, H, W, Cout), (0, 3, 1, 2))


if __name__ == "__main__":
    key = jax.random.PRNGKey(0)
    k_x, k_w, k_b = jax.random.split(key, 3)

    N, Cin, H, W = 2, 4, 16, 16
    Cout, K = 8, 3

    x = jax.random.normal(k_x, (N, Cin, H, W), dtype=jnp.float32)
    # Deterministic parameter init (kaiming-uniform-ish bound, like PyTorch).
    fan_in = Cin * K * K
    bound = 1.0 / (fan_in ** 0.5)
    w = jax.random.uniform(k_w, (Cout, Cin, K, K), dtype=jnp.float32,
                           minval=-bound, maxval=bound)
    b = jax.random.uniform(k_b, (Cout,), dtype=jnp.float32,
                           minval=-bound, maxval=bound)

    # Hoisted out of the per-call path: done once per weight update.
    band, b_tiled = prepare_conv_params(w, b, W, dtype=jnp.float32)

    fwd = jax.jit(functools.partial(conv2d_forward, kernel_size=K))
    y = jax.block_until_ready(fwd(x, band, b_tiled))

    # Reference check against XLA's conv (same semantics as nn.Conv2d + ReLU).
    y_ref = lax.conv_general_dilated(
        x, w, window_strides=(1, 1), padding=((1, 1), (1, 1)),
        dimension_numbers=("NCHW", "OIHW", "NCHW"))
    y_ref = jnp.maximum(y_ref + b.reshape(1, Cout, 1, 1), 0.0)

    assert y.shape == (N, Cout, H, W)
    assert jnp.allclose(y, y_ref, atol=2e-5, rtol=2e-5), \
        float(jnp.max(jnp.abs(y - y_ref)))
    print("KERNEL_OK")
</pallas_src>

<mosaic_0001>
module attributes {stable_mosaic.version = 11 : i64} {
  func.func @_matmul_bias_relu_kernel(%arg0: i32, %arg1: memref<32x192xf32, #tpu.memory_space<vmem>>, %arg2: memref<192x128xf32, #tpu.memory_space<vmem>>, %arg3: memref<1x128xf32, #tpu.memory_space<vmem>>, %arg4: memref<32x128xf32, #tpu.memory_space<vmem>>) attributes {dimension_semantics = [#tpu.dimension_semantics<parallel>], iteration_bounds = array<i64: 1>, scalar_prefetch = 0 : i64, scratch_operands = 0 : i64, tpu.core_type = #tpu.core_type<tc>, window_params = [{transform_indices = @transform_0, window_bounds = array<i64: 32, 192>}, {pipeline_mode = #tpu.pipeline_mode<synchronous>, transform_indices = @transform_1, window_bounds = array<i64: 192, 128>}, {pipeline_mode = #tpu.pipeline_mode<synchronous>, transform_indices = @transform_2, window_bounds = array<i64: 1, 128>}, {transform_indices = @transform_3, window_bounds = array<i64: 32, 128>}]} {
    %c0 = arith.constant 0 : index
    %c0_0 = arith.constant 0 : index
    %0 = vector.load %arg1[%c0, %c0_0] : memref<32x192xf32, #tpu.memory_space<vmem>>, vector<32x192xf32>
    %c0_1 = arith.constant 0 : index
    %c0_2 = arith.constant 0 : index
    %1 = vector.load %arg2[%c0_1, %c0_2] : memref<192x128xf32, #tpu.memory_space<vmem>>, vector<192x128xf32>
    %cst = arith.constant dense<0.000000e+00> : vector<32x128xf32>
    %2 = tpu.matmul %0, %1, %cst {dimension_numbers = #tpu.dot_dimension_numbers<[1], [0], [0], [1], [0, 0, 1, 1], [], []>} : vector<32x192xf32>, vector<192x128xf32>, vector<32x128xf32> -> vector<32x128xf32>
    %c0_3 = arith.constant 0 : index
    %c0_4 = arith.constant 0 : index
    %3 = vector.load %arg3[%c0_3, %c0_4] : memref<1x128xf32, #tpu.memory_space<vmem>>, vector<1x128xf32>
    %4 = vector.broadcast %3 : vector<1x128xf32> to vector<32x128xf32>
    %5 = arith.addf %2, %4 : vector<32x128xf32>
    %cst_5 = arith.constant 0.000000e+00 : f32
    %6 = vector.broadcast %cst_5 : f32 to vector<32x128xf32>
    %7 = arith.maximumf %5, %6 : vector<32x128xf32>
    %c0_6 = arith.constant 0 : index
    %c0_7 = arith.constant 0 : index
    %8 = vector.load %arg4[%c0_6, %c0_7] : memref<32x128xf32, #tpu.memory_space<vmem>>, vector<32x128xf32>
    tpu.vector_store %arg4[%c0_6, %c0_7], %7 {strides = array<i32>} : memref<32x128xf32, #tpu.memory_space<vmem>>, vector<32x128xf32>,
    return
  }
  func.func @transform_0(%arg0: i32) -> (i32, i32) {
    %c0_i32 = arith.constant 0 : i32
    %c0_i32_0 = arith.constant 0 : i32
    return %arg0, %c0_i32 : i32, i32
  }
  func.func @transform_1(%arg0: i32) -> (i32, i32) {
    %c0_i32 = arith.constant 0 : i32
    %c0_i32_0 = arith.constant 0 : i32
    %c0_i32_1 = arith.constant 0 : i32
    return %c0_i32, %c0_i32_0 : i32, i32
  }
  func.func @transform_2(%arg0: i32) -> (i32, i32) {
    %c0_i32 = arith.constant 0 : i32
    %c0_i32_0 = arith.constant 0 : i32
    %c0_i32_1 = arith.constant 0 : i32
    return %c0_i32, %c0_i32_0 : i32, i32
  }
  func.func @transform_3(%arg0: i32) -> (i32, i32) {
    %c0_i32 = arith.constant 0 : i32
    %c0_i32_0 = arith.constant 0 : i32
    return %arg0, %c0_i32 : i32, i32
  }
}

</mosaic_0001>

<bundles_post_ra>
// kernel: conv2d_forward.1
= control target key start
LH: loop header
LB: loop body
LE: loop exit
PB: predicated region body
PF: predicated region fallthrough
CT: control target
= control target key end

     0   :  { %v229_v0 = vmov 0.0|0.0   ;;  %vm53_vm0 = vcmask 523264   ;;  %s389_s1 = inlined_call_operand.vmem [shape: f32[192,128], index: 1, kind: input, shape index: {}]   ;;  %s390_s0 = inlined_call_operand.vmem [shape: f32[32,192], index: 0, kind: input, shape index: {}]   ;;  %s391_s2 = inlined_call_operand.vmem [shape: f32[1,128], index: 2, kind: input, shape index: {}]   ;;  %s392_s3 = inlined_call_operand.vmem [shape: f32[32,128], index: 3, kind: output, shape index: {}]  }
   0x1   :  { %168 = vmatprep.subr.bf16.mxu0 %v229_v0  ;;  %204 = vmatprep.subr.bf16.mxu1 %v229_v0  ;;  %v22_v1 = vld [vmem:[%s389_s1] sm:$0xff]  ;;  %v23_v2 = vld [vmem:[%s389_s1 + $0x8] sm:$0xff]  ;;  %v24_v3 = vld [vmem:[%s389_s1 + $0x10] sm:$0xff] }
   0x2   :  { %v169_v4 = vpack.c.bf16 %v23_v2, %v22_v1  ;;  %v25_v5 = vld [vmem:[%s389_s1 + $0x18] sm:$0xff]  ;;  %v26_v7 = vld [vmem:[%s389_s1 + $0x20] sm:$0xff]  ;;  %v27_v8 = vld [vmem:[%s389_s1 + $0x28] sm:$0xff] }
   0x3   :  { %v172_v6 = vpack.c.bf16 %v25_v5, %v24_v3  ;;  %v175_v9 = vpack.c.bf16 %v27_v8, %v26_v7  ;;  %v28_v10 = vld [vmem:[%s389_s1 + $0x30] sm:$0xff]  ;;  %v29_v11 = vld [vmem:[%s389_s1 + $0x38] sm:$0xff]  ;;  %v15_v12 = vld [vmem:[%s390_s0 + $0x8] sm:$0xff] }
   0x4   :  { %170 = vmatpush1.bf16.msra.mxu0 %v169_v4  ;;  %216 = vmatpush1.bf16.msra.mxu1 %v169_v4  ;;  %v19_v13 = vld [vmem:[%s390_s0 + $0x28] sm:$0xff]  ;;  %v178_v14 = vpack.c.bf16 %v29_v11, %v28_v10  ;;  %v30_v15 = vld [vmem:[%s389_s1 + $0x40] sm:$0xff]  ;;  %v32_v18 = vld [vmem:[%s389_s1 + $0x50] sm:$0xff] }
   0x5   :  { %171 = vmatprep.subr.bf16.mxu0 %v229_v0  ;;  %205 = vmatprep.subr.bf16.mxu1 %v229_v0  ;;  %v31_v16 = vld [vmem:[%s389_s1 + $0x48] sm:$0xff]  ;;  %v33_v19 = vld [vmem:[%s389_s1 + $0x58] sm:$0xff]  ;;  %v34_v21 = vld [vmem:[%s389_s1 + $0x60] sm:$0xff] }
   0x6   :  { %164 = vmatprep.mubr.msk.f32.mxu0 %vm53_vm0, %v15_v12  ;;  %166 = vmatprep.mubr.msk.f32.mxu1 %vm53_vm0, %v19_v13  ;;  %v181_v17 = vpack.c.bf16 %v31_v16, %v30_v15  ;;  %v184_v20 = vpack.c.bf16 %v33_v19, %v32_v18  ;;  %v35_v22 = vld [vmem:[%s389_s1 + $0x68] sm:$0xff]  ;;  %v36_v24 = vld [vmem:[%s389_s1 + $0x70] sm:$0xff]  ;;  %v37_v25 = vld [vmem:[%s389_s1 + $0x78] sm:$0xff] }
   0x7   :  { %v187_v23 = vpack.c.bf16 %v35_v22, %v34_v21  ;;  %v190_v26 = vpack.c.bf16 %v37_v25, %v36_v24  ;;  %v38_v27 = vld [vmem:[%s389_s1 + $0x80] sm:$0xff]  ;;  %v39_v28 = vld [vmem:[%s389_s1 + $0x88] sm:$0xff]  ;;  %v40_v30 = vld [vmem:[%s389_s1 + $0x90] sm:$0xff] }
   0x8   :  { %173 = vmatpush1.bf16.msra.mxu0 %v172_v6  ;;  %217 = vmatpush1.bf16.msra.mxu1 %v172_v6  ;;  %v193_v29 = vpack.c.bf16 %v39_v28, %v38_v27  ;;  %v41_v31 = vld [vmem:[%s389_s1 + $0x98] sm:$0xff]  ;;  %v42_v33 = vld [vmem:[%s389_s1 + $0xa0] sm:$0xff]  ;;  %v43_v34 = vld [vmem:[%s389_s1 + $0xa8] sm:$0xff] }
   0x9   :  { %174 = vmatprep.subr.bf16.mxu0 %v229_v0  ;;  %206 = vmatprep.subr.bf16.mxu1 %v229_v0  ;;  %v196_v32 = vpack.c.bf16 %v41_v31, %v40_v30  ;;  %v199_v35 = vpack.c.bf16 %v43_v34, %v42_v33  ;;  %v44_v36 = vld [vmem:[%s389_s1 + $0xb0] sm:$0xff]  ;;  %v45_v37 = vld [vmem:[%s389_s1 + $0xb8] sm:$0xff]  ;;  %v14_v39 = vld [vmem:[%s390_s0] sm:$0xff] }
   0xa   :  { %v202_v38 = vpack.c.bf16 %v45_v37, %v44_v36  ;;  %v18_v40 = vld [vmem:[%s390_s0 + $0x20] sm:$0xff]  ;;  %v17_v41 = vld [vmem:[%s390_s0 + $0x18] sm:$0xff]  ;;  %v16_v43 = vld [vmem:[%s390_s0 + $0x10] sm:$0xff] }
   0xb   :  { %v21_v42 = vld [vmem:[%s390_s0 + $0x38] sm:$0xff]  ;;  %v20_v44 = vld [vmem:[%s390_s0 + $0x30] sm:$0xff]  ;;  %v163_v45 = vld [vmem:[%s391_s2] ss:$0 sm:$0xff] }
   0xc   :  { %176 = vmatpush1.bf16.msra.mxu0 %v175_v9  ;;  %218 = vmatpush1.bf16.msra.mxu1 %v175_v9 }
   0xd   :  { %177 = vmatprep.subr.bf16.mxu0 %v229_v0  ;;  %207 = vmatprep.subr.bf16.mxu1 %v229_v0 }
  0x10   :  { %179 = vmatpush1.bf16.msra.mxu0 %v178_v14  ;;  %219 = vmatpush1.bf16.msra.mxu1 %v178_v14 }
  0x11   :  { %180 = vmatprep.subr.bf16.mxu0 %v229_v0  ;;  %208 = vmatprep.subr.bf16.mxu1 %v229_v0 }
  0x14   :  { %182 = vmatpush1.bf16.msra.mxu0 %v181_v17  ;;  %220 = vmatpush1.bf16.msra.mxu1 %v181_v17 }
  0x15   :  { %183 = vmatprep.subr.bf16.mxu0 %v229_v0  ;;  %209 = vmatprep.subr.bf16.mxu1 %v229_v0 }
  0x18   :  { %185 = vmatpush1.bf16.msra.mxu0 %v184_v20  ;;  %221 = vmatpush1.bf16.msra.mxu1 %v184_v20 }
  0x19   :  { %186 = vmatprep.subr.bf16.mxu0 %v229_v0  ;;  %210 = vmatprep.subr.bf16.mxu1 %v229_v0 }
  0x1c   :  { %188 = vmatpush1.bf16.msra.mxu0 %v187_v23  ;;  %222 = vmatpush1.bf16.msra.mxu1 %v187_v23 }
  0x1d   :  { %189 = vmatprep.subr.bf16.mxu0 %v229_v0  ;;  %211 = vmatprep.subr.bf16.mxu1 %v229_v0 }
  0x20   :  { %191 = vmatpush1.bf16.msra.mxu0 %v190_v26  ;;  %223 = vmatpush1.bf16.msra.mxu1 %v190_v26 }
  0x21   :  { %192 = vmatprep.subr.bf16.mxu0 %v229_v0  ;;  %212 = vmatprep.subr.bf16.mxu1 %v229_v0 }
  0x24   :  { %194 = vmatpush1.bf16.msra.mxu0 %v193_v29  ;;  %224 = vmatpush1.bf16.msra.mxu1 %v193_v29 }
  0x25   :  { %195 = vmatprep.subr.bf16.mxu0 %v229_v0  ;;  %213 = vmatprep.subr.bf16.mxu1 %v229_v0 }
  0x28   :  { %197 = vmatpush1.bf16.msra.mxu0 %v196_v32  ;;  %225 = vmatpush1.bf16.msra.mxu1 %v196_v32 }
  0x29   :  { %198 = vmatprep.subr.bf16.mxu0 %v229_v0  ;;  %214 = vmatprep.subr.bf16.mxu1 %v229_v0 }
  0x2c   :  { %200 = vmatpush1.bf16.msra.mxu0 %v199_v35  ;;  %226 = vmatpush1.bf16.msra.mxu1 %v199_v35 }
  0x2d   :  { %201 = vmatprep.subr.bf16.mxu0 %v229_v0  ;;  %215 = vmatprep.subr.bf16.mxu1 %v229_v0 }
  0x30   :  { %203 = vmatpush1.bf16.msra.mxu0 %v202_v38  ;;  %227 = vmatpush1.bf16.msra.mxu1 %v202_v38 }
  0x33   :  { %131 = vmatmul.mubr.f32.vlgmr.msra.gmra.mrb[0].mxu0 %v14_v39  ;;  %141 = vmatmul.mubr.f32.vlgmr.msra.gmra.mrb[0].mxu1 %v18_v40 }
  0x34   :  { %165 = vmatprep.mubr.msk.f32.mxu0 %vm53_vm0, %v17_v41  ;;  %167 = vmatprep.mubr.msk.f32.mxu1 %vm53_vm0, %v21_v42 }
  0x37   :  { %136 = vmatmul.mubr.f32.gmra.mrb[2].mxu0 %v16_v43  ;;  %146 = vmatmul.mubr.f32.gmra.mrb[2].mxu1 %v20_v44 }
 0x106   :  { %v132_v46 = vpop.f32.mrb[0].mxu0  ;;  %v142_v47 = vpop.f32.mrb[0].mxu1 }
 0x107   :  { %v133_v48 = vadd.f32 %v163_v45, %v132_v46  ;;  %v143_v49 = vadd.f32 %v163_v45, %v142_v47  ;;  %v134_v50 = vpop.f32.mrb[1].mxu0  ;;  %v144_v51 = vpop.f32.mrb[1].mxu1 }
 0x109   :  { %v151_v52 = vmax.f32 %v133_v48, 0.0  ;;  %v153_v53 = vmax.f32 %v143_v49, 0.0 }
 0x10a   :  { %v137_v54 = vpop.f32.mrb[2].mxu0  ;;  %v147_v55 = vpop.f32.mrb[2].mxu1 }
 0x10b   :  { %155 = vst [vmem:[%s392_s3] sm:$0xff] %v151_v52  ;;  %157 = vst [vmem:[%s392_s3 + $0x10] sm:$0xff] %v153_v53  ;;  %v138_v56 = vadd.f32 %v163_v45, %v137_v54  ;;  %v148_v57 = vadd.f32 %v163_v45, %v147_v55  ;;  %v139_v58 = vpop.f32.mrb[3].mxu0  ;;  %v149_v59 = vpop.f32.mrb[3].mxu1 }
 0x10d   :  { %v152_v60 = vmax.f32 %v138_v56, 0.0  ;;  %v154_v61 = vmax.f32 %v148_v57, 0.0 }
 0x10f   :  { %156 = vst [vmem:[%s392_s3 + $0x8] sm:$0xff] %v152_v60  ;;  %158 = vst [vmem:[%s392_s3 + $0x18] sm:$0xff] %v154_v61 }

</bundles_post_ra>
